<compile_context>
chip_gen: v7x
topology: tpu7x:2x2x1
jax: 0.10.0
libtpu: 0.0.40
codegen_flags: <defaults>
</compile_context>

<pallas_src>
import jax
import jax.numpy as jnp
from jax.experimental import pallas as pl
from jax.experimental.pallas import tpu as pltpu


# ------------------------------- fused kernel -------------------------------

def _upconv_fused_kernel(dec_ref, enc_ref, wup_ref, bup_ref, perm_ref,
                         w1u_ref, w1e_ref, b1_ref, w2_ref, b2_ref,
                         out_ref, up_pad, enc_pad, y1_pad):
    H2 = out_ref.shape[1]          # upsampled height (2 * Hd)
    WC = out_ref.shape[2]          # W2 * Cout  (lane-packed width*channels)
    bf16 = jnp.bfloat16
    f32 = jnp.float32

    # Zero the padded scratches: rows 0 and H2+1 are the 3x3 "same" halo.
    up_pad[...] = jnp.zeros_like(up_pad)
    enc_pad[...] = jnp.zeros_like(enc_pad)
    y1_pad[...] = jnp.zeros_like(y1_pad)

    # ---- upconv: ConvTranspose2d(k=2, s=2) + bias + ReLU (act0) -------------
    # Column interleave of the 2x upsample is folded into wup (block-diagonal
    # weight); row interleave is a 0/1 selection matmul (perm).
    dec2 = dec_ref[0].astype(bf16)                               # (Hd, Wd*Cin)
    y_even = jnp.dot(dec2, wup_ref[0], preferred_element_type=f32) + bup_ref[...]
    y_odd = jnp.dot(dec2, wup_ref[1], preferred_element_type=f32) + bup_ref[...]
    y_even = jnp.maximum(y_even, 0.0).astype(bf16)               # updec rows 2r
    y_odd = jnp.maximum(y_odd, 0.0).astype(bf16)                 # updec rows 2r+1
    up = jnp.dot(perm_ref[0], y_even, preferred_element_type=f32)
    up = up + jnp.dot(perm_ref[1], y_odd, preferred_element_type=f32)
    up_pad[1:H2 + 1, :] = up.astype(bf16)

    # Encoder skip (already centre-cropped): no HBM concat — it simply uses its
    # own half of the split conv1 weights below.
    enc_pad[1:H2 + 1, :] = enc_ref[0].astype(bf16)

    # ---- conv1 (3x3, pad=1) over concat(updec, enc) + ReLU (act1) -----------
    # 3 row-tap matmuls per input path against block-banded weights
    # (width im2col baked into the weights; K = W2*Cout).
    acc = jnp.broadcast_to(b1_ref[...], (H2, WC))                # bias in init
    for kh in range(3):
        acc = acc + jnp.dot(up_pad[kh:kh + H2, :], w1u_ref[kh],
                            preferred_element_type=f32)
        acc = acc + jnp.dot(enc_pad[kh:kh + H2, :], w1e_ref[kh],
                            preferred_element_type=f32)
    y1_pad[1:H2 + 1, :] = jnp.maximum(acc, 0.0).astype(bf16)

    # ---- conv2 (3x3, pad=1) + ReLU (act2), lane-dense output store ----------
    acc2 = jnp.broadcast_to(b2_ref[...], (H2, WC))
    for kh in range(3):
        acc2 = acc2 + jnp.dot(y1_pad[kh:kh + H2, :], w2_ref[kh],
                              preferred_element_type=f32)
    out_ref[0] = jnp.maximum(acc2, 0.0).astype(out_ref.dtype)


# ------------------------- wrapper-side weight folding -----------------------

def _banded_conv_weights(w_oihw, width, dtype):
    """3x3 'same' conv -> 3 row-tap block-banded matmul weights.

    Returns bw of shape (3, width*Cin, width*Cout) with
      bw[kh][w_in*Cin + ci, w_out*Cout + co] = w_oihw[co, ci, kh, kw]
    whenever w_in == w_out + kw - 1 (taps falling off the band == zero pad).
    """
    s = jnp.transpose(w_oihw, (2, 3, 1, 0)).astype(jnp.float32)  # (3,3,Cin,Cout)
    cin, cout = s.shape[2], s.shape[3]
    taps = []
    for kh in range(3):
        m = jnp.zeros((width * cin, width * cout), jnp.float32)
        for kw in range(3):
            m = m + jnp.kron(jnp.eye(width, k=1 - kw, dtype=jnp.float32),
                             s[kh, kw])
        taps.append(m)
    return jnp.stack(taps).astype(dtype)


def upconv_forward(enc_nchw, dec_nchw, params):
    """enc: [N, Cout, He, We], dec: [N, Cin, Hd, Wd] (NCHW). Returns NCHW."""
    N, Ci, Hd, Wd = dec_nchw.shape
    C = params["up_b"].shape[0]
    H2, W2 = 2 * Hd, 2 * Wd
    WC = W2 * C
    bf16 = jnp.bfloat16
    f32 = jnp.float32

    # --- autocrop: center-crop enc to the upsampled spatial shape (static) ---
    He, We = enc_nchw.shape[2], enc_nchw.shape[3]
    if (He, We) != (H2, W2):
        enc_nchw = enc_nchw[:, :, (He - H2) // 2:(He + H2) // 2,
                            (We - W2) // 2:(We + W2) // 2]

    # --- lane-packed 2-D activation layout: X2[n, h, w*C + c] = X[n, c, h, w] ---
    dec2 = jnp.transpose(dec_nchw, (0, 2, 3, 1)).reshape(N, Hd, Wd * Ci)
    enc2 = jnp.transpose(enc_nchw, (0, 2, 3, 1)).reshape(N, H2, WC)

    # --- ConvTranspose2d(k=2, s=2): fold the column (W) interleave into wup ---
    # up_w: [Cin, Cout, 2, 2]; M[di][ci, dj*C + co] = up_w[ci, co, di, dj]
    m_up = jnp.transpose(params["up_w"], (2, 0, 3, 1)).reshape(2, Ci, 2 * C)
    eye_w = jnp.eye(Wd, dtype=f32)
    wup = jnp.stack([jnp.kron(eye_w, m_up[0].astype(f32)),
                     jnp.kron(eye_w, m_up[1].astype(f32))]).astype(bf16)
    bup = jnp.tile(params["up_b"], W2).reshape(1, WC).astype(f32)

    # Row (H) interleave of the pixel shuffle: perm[di][h, r] = [h == 2r + di].
    eye_h = jnp.eye(Hd, dtype=f32)
    perm = jnp.stack([jnp.kron(eye_h, jnp.array([[1.0], [0.0]], f32)),
                      jnp.kron(eye_h, jnp.array([[0.0], [1.0]], f32))]).astype(bf16)

    # conv1 weight split: conv1(concat(updec, enc)) = conv1a(updec) + conv1b(enc)
    bw1u = _banded_conv_weights(params["c1_w"][:, :C], W2, bf16)   # (3, WC, WC)
    bw1e = _banded_conv_weights(params["c1_w"][:, C:], W2, bf16)   # (3, WC, WC)
    bw2 = _banded_conv_weights(params["c2_w"], W2, bf16)           # (3, WC, WC)
    b1 = jnp.tile(params["c1_b"], W2).reshape(1, WC).astype(f32)
    b2 = jnp.tile(params["c2_b"], W2).reshape(1, WC).astype(f32)

    out2 = pl.pallas_call(
        _upconv_fused_kernel,
        out_shape=jax.ShapeDtypeStruct((N, H2, WC), dec_nchw.dtype),
        grid=(N,),
        in_specs=[
            pl.BlockSpec((1, Hd, Wd * Ci), lambda n: (n, 0, 0)),   # dec
            pl.BlockSpec((1, H2, WC), lambda n: (n, 0, 0)),        # enc (cropped)
            pl.BlockSpec((2, Wd * Ci, WC), lambda n: (0, 0, 0)),   # wup
            pl.BlockSpec((1, WC), lambda n: (0, 0)),               # up bias
            pl.BlockSpec((2, H2, Hd), lambda n: (0, 0, 0)),        # row perm
            pl.BlockSpec((3, WC, WC), lambda n: (0, 0, 0)),        # conv1 (updec)
            pl.BlockSpec((3, WC, WC), lambda n: (0, 0, 0)),        # conv1 (enc)
            pl.BlockSpec((1, WC), lambda n: (0, 0)),               # conv1 bias
            pl.BlockSpec((3, WC, WC), lambda n: (0, 0, 0)),        # conv2
            pl.BlockSpec((1, WC), lambda n: (0, 0)),               # conv2 bias
        ],
        out_specs=pl.BlockSpec((1, H2, WC), lambda n: (n, 0, 0)),
        scratch_shapes=[
            pltpu.VMEM((H2 + 2, WC), bf16),   # padded updec
            pltpu.VMEM((H2 + 2, WC), bf16),   # padded cropped enc
            pltpu.VMEM((H2 + 2, WC), bf16),   # padded conv1 output
        ],
        compiler_params=pltpu.CompilerParams(
            dimension_semantics=("parallel",)),
    )(dec2, enc2, wup, bup, perm, bw1u, bw1e, b1, bw2, b2)

    # un-pack: [N, H2, W2*C] -> [N, H2, W2, C] (free) -> NCHW
    return jnp.transpose(out2.reshape(N, H2, W2, C), (0, 3, 1, 2))


# ------------------------------ pure-JAX reference ---------------------------

def upconv_reference(enc, dec, p):
    """NCHW f32 reference using lax convolutions (ground truth)."""
    N, Cin, Hd, Wd = dec.shape
    C = p["up_b"].shape[0]
    up = jnp.einsum("ncij,codk->noidjk", dec, p["up_w"])
    up = up.reshape(N, C, 2 * Hd, 2 * Wd) + p["up_b"][None, :, None, None]
    up = jnp.maximum(up, 0.0)
    eh, ew = enc.shape[2], enc.shape[3]
    uh, uw = up.shape[2], up.shape[3]
    if (eh, ew) != (uh, uw):
        enc = enc[:, :, (eh - uh) // 2:(eh + uh) // 2,
                  (ew - uw) // 2:(ew + uw) // 2]
    mrg = jnp.concatenate([up, enc], axis=1)
    dn = ("NCHW", "OIHW", "NCHW")
    y = jax.lax.conv_general_dilated(mrg, p["c1_w"], (1, 1), ((1, 1), (1, 1)),
                                     dimension_numbers=dn) \
        + p["c1_b"][None, :, None, None]
    y = jnp.maximum(y, 0.0)
    y = jax.lax.conv_general_dilated(y, p["c2_w"], (1, 1), ((1, 1), (1, 1)),
                                     dimension_numbers=dn) \
        + p["c2_b"][None, :, None, None]
    return jnp.maximum(y, 0.0)


# ----------------------------------- main -----------------------------------

if __name__ == "__main__":
    in_channels, out_channels = 8, 4
    N, Hd, Wd = 2, 8, 8                        # dec spatial -> updec is 16x16

    key = jax.random.PRNGKey(0)
    k = jax.random.split(key, 8)
    params = {
        # ConvTranspose2d weight: [in_channels, out_channels, 2, 2]
        "up_w": 0.1 * jax.random.normal(k[0], (in_channels, out_channels, 2, 2),
                                        jnp.float32),
        "up_b": 0.1 * jax.random.normal(k[1], (out_channels,), jnp.float32),
        # Conv2d weights: [Cout, Cin, 3, 3]
        "c1_w": 0.1 * jax.random.normal(k[2], (out_channels, 2 * out_channels,
                                               3, 3), jnp.float32),
        "c1_b": 0.1 * jax.random.normal(k[3], (out_channels,), jnp.float32),
        "c2_w": 0.1 * jax.random.normal(k[4], (out_channels, out_channels,
                                               3, 3), jnp.float32),
        "c2_b": 0.1 * jax.random.normal(k[5], (out_channels,), jnp.float32),
    }

    dec = jax.random.normal(k[6], (N, in_channels, Hd, Wd), jnp.float32)
    enc = jax.random.normal(k[7], (N, out_channels, 2 * Hd, 2 * Wd), jnp.float32)

    out = jax.jit(upconv_forward)(enc, dec, params)
    out = jax.block_until_ready(out)

    ref = jax.block_until_ready(upconv_reference(enc, dec, params))
    assert out.shape == (N, out_channels, 2 * Hd, 2 * Wd), out.shape
    # bf16 matmul operands (f32 accumulation) -> relaxed tolerance vs f32 ref.
    assert jnp.allclose(out, ref, atol=5e-2, rtol=5e-2), \
        float(jnp.max(jnp.abs(out - ref)))

    # TODO(synk): batch_norm=False path only; em.get_batchnorm branch not implemented.
    print("KERNEL_OK")
</pallas_src>

<mosaic_0001>
module attributes {stable_mosaic.version = 11 : i64} {
  func.func @_upconv_fused_kernel(%arg0: i32, %arg1: memref<1x8x64xf32, #tpu.memory_space<vmem>>, %arg2: memref<1x16x64xf32, #tpu.memory_space<vmem>>, %arg3: memref<2x64x64xbf16, #tpu.memory_space<vmem>>, %arg4: memref<1x64xf32, #tpu.memory_space<vmem>>, %arg5: memref<2x16x8xbf16, #tpu.memory_space<vmem>>, %arg6: memref<3x64x64xbf16, #tpu.memory_space<vmem>>, %arg7: memref<3x64x64xbf16, #tpu.memory_space<vmem>>, %arg8: memref<1x64xf32, #tpu.memory_space<vmem>>, %arg9: memref<3x64x64xbf16, #tpu.memory_space<vmem>>, %arg10: memref<1x64xf32, #tpu.memory_space<vmem>>, %arg11: memref<1x16x64xf32, #tpu.memory_space<vmem>>, %arg12: memref<18x64xbf16, #tpu.memory_space<vmem>>, %arg13: memref<18x64xbf16, #tpu.memory_space<vmem>>, %arg14: memref<18x64xbf16, #tpu.memory_space<vmem>>) attributes {dimension_semantics = [#tpu.dimension_semantics<parallel>], iteration_bounds = array<i64: 2>, scalar_prefetch = 0 : i64, scratch_operands = 3 : i64, tpu.core_type = #tpu.core_type<tc>, window_params = [{transform_indices = @transform_0, window_bounds = array<i64: 1, 8, 64>}, {transform_indices = @transform_1, window_bounds = array<i64: 1, 16, 64>}, {pipeline_mode = #tpu.pipeline_mode<synchronous>, transform_indices = @transform_2, window_bounds = array<i64: 2, 64, 64>}, {pipeline_mode = #tpu.pipeline_mode<synchronous>, transform_indices = @transform_3, window_bounds = array<i64: 1, 64>}, {pipeline_mode = #tpu.pipeline_mode<synchronous>, transform_indices = @transform_4, window_bounds = array<i64: 2, 16, 8>}, {pipeline_mode = #tpu.pipeline_mode<synchronous>, transform_indices = @transform_5, window_bounds = array<i64: 3, 64, 64>}, {pipeline_mode = #tpu.pipeline_mode<synchronous>, transform_indices = @transform_6, window_bounds = array<i64: 3, 64, 64>}, {pipeline_mode = #tpu.pipeline_mode<synchronous>, transform_indices = @transform_7, window_bounds = array<i64: 1, 64>}, {pipeline_mode = #tpu.pipeline_mode<synchronous>, transform_indices = @transform_8, window_bounds = array<i64: 3, 64, 64>}, {pipeline_mode = #tpu.pipeline_mode<synchronous>, transform_indices = @transform_9, window_bounds = array<i64: 1, 64>}, {transform_indices = @transform_10, window_bounds = array<i64: 1, 16, 64>}]} {
    %cst = arith.constant 0.000000e+00 : bf16
    %0 = vector.broadcast %cst : bf16 to vector<18x64xbf16>
    %c0 = arith.constant 0 : index
    %c0_0 = arith.constant 0 : index
    %1 = vector.load %arg12[%c0, %c0_0] : memref<18x64xbf16, #tpu.memory_space<vmem>>, vector<18x64xbf16>
    tpu.vector_store %arg12[%c0, %c0_0], %0 {strides = array<i32>} : memref<18x64xbf16, #tpu.memory_space<vmem>>, vector<18x64xbf16>,
    %cst_1 = arith.constant 0.000000e+00 : bf16
    %2 = vector.broadcast %cst_1 : bf16 to vector<18x64xbf16>
    %c0_2 = arith.constant 0 : index
    %c0_3 = arith.constant 0 : index
    %3 = vector.load %arg13[%c0_2, %c0_3] : memref<18x64xbf16, #tpu.memory_space<vmem>>, vector<18x64xbf16>
    tpu.vector_store %arg13[%c0_2, %c0_3], %2 {strides = array<i32>} : memref<18x64xbf16, #tpu.memory_space<vmem>>, vector<18x64xbf16>,
    %cst_4 = arith.constant 0.000000e+00 : bf16
    %4 = vector.broadcast %cst_4 : bf16 to vector<18x64xbf16>
    %c0_5 = arith.constant 0 : index
    %c0_6 = arith.constant 0 : index
    %5 = vector.load %arg14[%c0_5, %c0_6] : memref<18x64xbf16, #tpu.memory_space<vmem>>, vector<18x64xbf16>
    tpu.vector_store %arg14[%c0_5, %c0_6], %4 {strides = array<i32>} : memref<18x64xbf16, #tpu.memory_space<vmem>>, vector<18x64xbf16>,
    %c0_7 = arith.constant 0 : index
    %c0_8 = arith.constant 0 : index
    %c0_9 = arith.constant 0 : index
    %6 = vector.load %arg1[%c0_7, %c0_8, %c0_9] : memref<1x8x64xf32, #tpu.memory_space<vmem>>, vector<1x8x64xf32>
    %7 = vector.shape_cast %6 : vector<1x8x64xf32> to vector<8x64xf32>
    %8 = arith.truncf %7 : vector<8x64xf32> to vector<8x64xbf16>
    %c0_10 = arith.constant 0 : index
    %c0_11 = arith.constant 0 : index
    %c0_12 = arith.constant 0 : index
    %9 = vector.load %arg3[%c0_10, %c0_11, %c0_12] : memref<2x64x64xbf16, #tpu.memory_space<vmem>>, vector<1x64x64xbf16>
    %10 = vector.shape_cast %9 : vector<1x64x64xbf16> to vector<64x64xbf16>
    %cst_13 = arith.constant dense<0.000000e+00> : vector<8x64xf32>
    %11 = tpu.matmul %8, %10, %cst_13 {dimension_numbers = #tpu.dot_dimension_numbers<[1], [0], [0], [1], [0, 0, 1, 1], [], []>} : vector<8x64xbf16>, vector<64x64xbf16>, vector<8x64xf32> -> vector<8x64xf32>
    %c0_14 = arith.constant 0 : index
    %c0_15 = arith.constant 0 : index
    %12 = vector.load %arg4[%c0_14, %c0_15] : memref<1x64xf32, #tpu.memory_space<vmem>>, vector<1x64xf32>
    %13 = vector.broadcast %12 : vector<1x64xf32> to vector<8x64xf32>
    %14 = arith.addf %11, %13 : vector<8x64xf32>
    %c1 = arith.constant 1 : index
    %c0_16 = arith.constant 0 : index
    %c0_17 = arith.constant 0 : index
    %15 = vector.load %arg3[%c1, %c0_16, %c0_17] : memref<2x64x64xbf16, #tpu.memory_space<vmem>>, vector<1x64x64xbf16>
    %16 = vector.shape_cast %15 : vector<1x64x64xbf16> to vector<64x64xbf16>
    %cst_18 = arith.constant dense<0.000000e+00> : vector<8x64xf32>
    %17 = tpu.matmul %8, %16, %cst_18 {dimension_numbers = #tpu.dot_dimension_numbers<[1], [0], [0], [1], [0, 0, 1, 1], [], []>} : vector<8x64xbf16>, vector<64x64xbf16>, vector<8x64xf32> -> vector<8x64xf32>
    %c0_19 = arith.constant 0 : index
    %c0_20 = arith.constant 0 : index
    %18 = vector.load %arg4[%c0_19, %c0_20] : memref<1x64xf32, #tpu.memory_space<vmem>>, vector<1x64xf32>
    %19 = vector.broadcast %18 : vector<1x64xf32> to vector<8x64xf32>
    %20 = arith.addf %17, %19 : vector<8x64xf32>
    %cst_21 = arith.constant 0.000000e+00 : f32
    %21 = vector.broadcast %cst_21 : f32 to vector<8x64xf32>
    %22 = arith.maximumf %14, %21 : vector<8x64xf32>
    %23 = arith.truncf %22 : vector<8x64xf32> to vector<8x64xbf16>
    %cst_22 = arith.constant 0.000000e+00 : f32
    %24 = vector.broadcast %cst_22 : f32 to vector<8x64xf32>
    %25 = arith.maximumf %20, %24 : vector<8x64xf32>
    %26 = arith.truncf %25 : vector<8x64xf32> to vector<8x64xbf16>
    %c0_23 = arith.constant 0 : index
    %c0_24 = arith.constant 0 : index
    %c0_25 = arith.constant 0 : index
    %27 = vector.load %arg5[%c0_23, %c0_24, %c0_25] : memref<2x16x8xbf16, #tpu.memory_space<vmem>>, vector<1x16x8xbf16>
    %28 = vector.shape_cast %27 : vector<1x16x8xbf16> to vector<16x8xbf16>
    %cst_26 = arith.constant dense<0.000000e+00> : vector<16x64xf32>
    %29 = tpu.matmul %28, %23, %cst_26 {dimension_numbers = #tpu.dot_dimension_numbers<[1], [0], [0], [1], [0, 0, 1, 1], [], []>} : vector<16x8xbf16>, vector<8x64xbf16>, vector<16x64xf32> -> vector<16x64xf32>
    %c1_27 = arith.constant 1 : index
    %c0_28 = arith.constant 0 : index
    %c0_29 = arith.constant 0 : index
    %30 = vector.load %arg5[%c1_27, %c0_28, %c0_29] : memref<2x16x8xbf16, #tpu.memory_space<vmem>>, vector<1x16x8xbf16>
    %31 = vector.shape_cast %30 : vector<1x16x8xbf16> to vector<16x8xbf16>
    %cst_30 = arith.constant dense<0.000000e+00> : vector<16x64xf32>
    %32 = tpu.matmul %31, %26, %cst_30 {dimension_numbers = #tpu.dot_dimension_numbers<[1], [0], [0], [1], [0, 0, 1, 1], [], []>} : vector<16x8xbf16>, vector<8x64xbf16>, vector<16x64xf32> -> vector<16x64xf32>
    %33 = arith.addf %29, %32 : vector<16x64xf32>
    %34 = arith.truncf %33 : vector<16x64xf32> to vector<16x64xbf16>
    %c1_31 = arith.constant 1 : index
    %c0_32 = arith.constant 0 : index
    %35 = vector.load %arg12[%c1_31, %c0_32] : memref<18x64xbf16, #tpu.memory_space<vmem>>, vector<16x64xbf16>
    tpu.vector_store %arg12[%c1_31, %c0_32], %34 {strides = array<i32>} : memref<18x64xbf16, #tpu.memory_space<vmem>>, vector<16x64xbf16>,
    %c0_33 = arith.constant 0 : index
    %c0_34 = arith.constant 0 : index
    %c0_35 = arith.constant 0 : index
    %36 = vector.load %arg2[%c0_33, %c0_34, %c0_35] : memref<1x16x64xf32, #tpu.memory_space<vmem>>, vector<1x16x64xf32>
    %37 = vector.shape_cast %36 : vector<1x16x64xf32> to vector<16x64xf32>
    %38 = arith.truncf %37 : vector<16x64xf32> to vector<16x64xbf16>
    %c1_36 = arith.constant 1 : index
    %c0_37 = arith.constant 0 : index
    %39 = vector.load %arg13[%c1_36, %c0_37] : memref<18x64xbf16, #tpu.memory_space<vmem>>, vector<16x64xbf16>
    tpu.vector_store %arg13[%c1_36, %c0_37], %38 {strides = array<i32>} : memref<18x64xbf16, #tpu.memory_space<vmem>>, vector<16x64xbf16>,
    %c0_38 = arith.constant 0 : index
    %c0_39 = arith.constant 0 : index
    %40 = vector.load %arg8[%c0_38, %c0_39] : memref<1x64xf32, #tpu.memory_space<vmem>>, vector<1x64xf32>
    %41 = vector.shape_cast %40 : vector<1x64xf32> to vector<1x64xf32>
    %42 = vector.broadcast %41 : vector<1x64xf32> to vector<16x64xf32>
    %c0_40 = arith.constant 0 : index
    %c0_41 = arith.constant 0 : index
    %43 = vector.load %arg12[%c0_40, %c0_41] : memref<18x64xbf16, #tpu.memory_space<vmem>>, vector<16x64xbf16>
    %c0_42 = arith.constant 0 : index
    %c0_43 = arith.constant 0 : index
    %c0_44 = arith.constant 0 : index
    %44 = vector.load %arg6[%c0_42, %c0_43, %c0_44] : memref<3x64x64xbf16, #tpu.memory_space<vmem>>, vector<1x64x64xbf16>
    %45 = vector.shape_cast %44 : vector<1x64x64xbf16> to vector<64x64xbf16>
    %cst_45 = arith.constant dense<0.000000e+00> : vector<16x64xf32>
    %46 = tpu.matmul %43, %45, %cst_45 {dimension_numbers = #tpu.dot_dimension_numbers<[1], [0], [0], [1], [0, 0, 1, 1], [], []>} : vector<16x64xbf16>, vector<64x64xbf16>, vector<16x64xf32> -> vector<16x64xf32>
    %47 = arith.addf %42, %46 : vector<16x64xf32>
    %c0_46 = arith.constant 0 : index
    %c0_47 = arith.constant 0 : index
    %48 = vector.load %arg13[%c0_46, %c0_47] : memref<18x64xbf16, #tpu.memory_space<vmem>>, vector<16x64xbf16>
    %c0_48 = arith.constant 0 : index
    %c0_49 = arith.constant 0 : index
    %c0_50 = arith.constant 0 : index
    %49 = vector.load %arg7[%c0_48, %c0_49, %c0_50] : memref<3x64x64xbf16, #tpu.memory_space<vmem>>, vector<1x64x64xbf16>
    %50 = vector.shape_cast %49 : vector<1x64x64xbf16> to vector<64x64xbf16>
    %cst_51 = arith.constant dense<0.000000e+00> : vector<16x64xf32>
    %51 = tpu.matmul %48, %50, %cst_51 {dimension_numbers = #tpu.dot_dimension_numbers<[1], [0], [0], [1], [0, 0, 1, 1], [], []>} : vector<16x64xbf16>, vector<64x64xbf16>, vector<16x64xf32> -> vector<16x64xf32>
    %52 = arith.addf %47, %51 : vector<16x64xf32>
    %c1_52 = arith.constant 1 : index
    %c0_53 = arith.constant 0 : index
    %53 = vector.load %arg12[%c1_52, %c0_53] : memref<18x64xbf16, #tpu.memory_space<vmem>>, vector<16x64xbf16>
    %c1_54 = arith.constant 1 : index
    %c0_55 = arith.constant 0 : index
    %c0_56 = arith.constant 0 : index
    %54 = vector.load %arg6[%c1_54, %c0_55, %c0_56] : memref<3x64x64xbf16, #tpu.memory_space<vmem>>, vector<1x64x64xbf16>
    %55 = vector.shape_cast %54 : vector<1x64x64xbf16> to vector<64x64xbf16>
    %cst_57 = arith.constant dense<0.000000e+00> : vector<16x64xf32>
    %56 = tpu.matmul %53, %55, %cst_57 {dimension_numbers = #tpu.dot_dimension_numbers<[1], [0], [0], [1], [0, 0, 1, 1], [], []>} : vector<16x64xbf16>, vector<64x64xbf16>, vector<16x64xf32> -> vector<16x64xf32>
    %57 = arith.addf %52, %56 : vector<16x64xf32>
    %c1_58 = arith.constant 1 : index
    %c0_59 = arith.constant 0 : index
    %58 = vector.load %arg13[%c1_58, %c0_59] : memref<18x64xbf16, #tpu.memory_space<vmem>>, vector<16x64xbf16>
    %c1_60 = arith.constant 1 : index
    %c0_61 = arith.constant 0 : index
    %c0_62 = arith.constant 0 : index
    %59 = vector.load %arg7[%c1_60, %c0_61, %c0_62] : memref<3x64x64xbf16, #tpu.memory_space<vmem>>, vector<1x64x64xbf16>
    %60 = vector.shape_cast %59 : vector<1x64x64xbf16> to vector<64x64xbf16>
    %cst_63 = arith.constant dense<0.000000e+00> : vector<16x64xf32>
    %61 = tpu.matmul %58, %60, %cst_63 {dimension_numbers = #tpu.dot_dimension_numbers<[1], [0], [0], [1], [0, 0, 1, 1], [], []>} : vector<16x64xbf16>, vector<64x64xbf16>, vector<16x64xf32> -> vector<16x64xf32>
    %62 = arith.addf %57, %61 : vector<16x64xf32>
    %c2 = arith.constant 2 : index
    %c0_64 = arith.constant 0 : index
    %63 = vector.load %arg12[%c2, %c0_64] : memref<18x64xbf16, #tpu.memory_space<vmem>>, vector<16x64xbf16>
    %c2_65 = arith.constant 2 : index
    %c0_66 = arith.constant 0 : index
    %c0_67 = arith.constant 0 : index
    %64 = vector.load %arg6[%c2_65, %c0_66, %c0_67] : memref<3x64x64xbf16, #tpu.memory_space<vmem>>, vector<1x64x64xbf16>
    %65 = vector.shape_cast %64 : vector<1x64x64xbf16> to vector<64x64xbf16>
    %cst_68 = arith.constant dense<0.000000e+00> : vector<16x64xf32>
    %66 = tpu.matmul %63, %65, %cst_68 {dimension_numbers = #tpu.dot_dimension_numbers<[1], [0], [0], [1], [0, 0, 1, 1], [], []>} : vector<16x64xbf16>, vector<64x64xbf16>, vector<16x64xf32> -> vector<16x64xf32>
    %67 = arith.addf %62, %66 : vector<16x64xf32>
    %c2_69 = arith.constant 2 : index
    %c0_70 = arith.constant 0 : index
    %68 = vector.load %arg13[%c2_69, %c0_70] : memref<18x64xbf16, #tpu.memory_space<vmem>>, vector<16x64xbf16>
    %c2_71 = arith.constant 2 : index
    %c0_72 = arith.constant 0 : index
    %c0_73 = arith.constant 0 : index
    %69 = vector.load %arg7[%c2_71, %c0_72, %c0_73] : memref<3x64x64xbf16, #tpu.memory_space<vmem>>, vector<1x64x64xbf16>
    %70 = vector.shape_cast %69 : vector<1x64x64xbf16> to vector<64x64xbf16>
    %cst_74 = arith.constant dense<0.000000e+00> : vector<16x64xf32>
    %71 = tpu.matmul %68, %70, %cst_74 {dimension_numbers = #tpu.dot_dimension_numbers<[1], [0], [0], [1], [0, 0, 1, 1], [], []>} : vector<16x64xbf16>, vector<64x64xbf16>, vector<16x64xf32> -> vector<16x64xf32>
    %72 = arith.addf %67, %71 : vector<16x64xf32>
    %cst_75 = arith.constant 0.000000e+00 : f32
    %73 = vector.broadcast %cst_75 : f32 to vector<16x64xf32>
    %74 = arith.maximumf %72, %73 : vector<16x64xf32>
    %75 = arith.truncf %74 : vector<16x64xf32> to vector<16x64xbf16>
    %c1_76 = arith.constant 1 : index
    %c0_77 = arith.constant 0 : index
    %76 = vector.load %arg14[%c1_76, %c0_77] : memref<18x64xbf16, #tpu.memory_space<vmem>>, vector<16x64xbf16>
    tpu.vector_store %arg14[%c1_76, %c0_77], %75 {strides = array<i32>} : memref<18x64xbf16, #tpu.memory_space<vmem>>, vector<16x64xbf16>,
    %c0_78 = arith.constant 0 : index
    %c0_79 = arith.constant 0 : index
    %77 = vector.load %arg10[%c0_78, %c0_79] : memref<1x64xf32, #tpu.memory_space<vmem>>, vector<1x64xf32>
    %78 = vector.shape_cast %77 : vector<1x64xf32> to vector<1x64xf32>
    %79 = vector.broadcast %78 : vector<1x64xf32> to vector<16x64xf32>
    %c0_80 = arith.constant 0 : index
    %c0_81 = arith.constant 0 : index
    %80 = vector.load %arg14[%c0_80, %c0_81] : memref<18x64xbf16, #tpu.memory_space<vmem>>, vector<16x64xbf16>
    %c0_82 = arith.constant 0 : index
    %c0_83 = arith.constant 0 : index
    %c0_84 = arith.constant 0 : index
    %81 = vector.load %arg9[%c0_82, %c0_83, %c0_84] : memref<3x64x64xbf16, #tpu.memory_space<vmem>>, vector<1x64x64xbf16>
    %82 = vector.shape_cast %81 : vector<1x64x64xbf16> to vector<64x64xbf16>
    %cst_85 = arith.constant dense<0.000000e+00> : vector<16x64xf32>
    %83 = tpu.matmul %80, %82, %cst_85 {dimension_numbers = #tpu.dot_dimension_numbers<[1], [0], [0], [1], [0, 0, 1, 1], [], []>} : vector<16x64xbf16>, vector<64x64xbf16>, vector<16x64xf32> -> vector<16x64xf32>
    %84 = arith.addf %79, %83 : vector<16x64xf32>
    %c1_86 = arith.constant 1 : index
    %c0_87 = arith.constant 0 : index
    %85 = vector.load %arg14[%c1_86, %c0_87] : memref<18x64xbf16, #tpu.memory_space<vmem>>, vector<16x64xbf16>
    %c1_88 = arith.constant 1 : index
    %c0_89 = arith.constant 0 : index
    %c0_90 = arith.constant 0 : index
    %86 = vector.load %arg9[%c1_88, %c0_89, %c0_90] : memref<3x64x64xbf16, #tpu.memory_space<vmem>>, vector<1x64x64xbf16>
    %87 = vector.shape_cast %86 : vector<1x64x64xbf16> to vector<64x64xbf16>
    %cst_91 = arith.constant dense<0.000000e+00> : vector<16x64xf32>
    %88 = tpu.matmul %85, %87, %cst_91 {dimension_numbers = #tpu.dot_dimension_numbers<[1], [0], [0], [1], [0, 0, 1, 1], [], []>} : vector<16x64xbf16>, vector<64x64xbf16>, vector<16x64xf32> -> vector<16x64xf32>
    %89 = arith.addf %84, %88 : vector<16x64xf32>
    %c2_92 = arith.constant 2 : index
    %c0_93 = arith.constant 0 : index
    %90 = vector.load %arg14[%c2_92, %c0_93] : memref<18x64xbf16, #tpu.memory_space<vmem>>, vector<16x64xbf16>
    %c2_94 = arith.constant 2 : index
    %c0_95 = arith.constant 0 : index
    %c0_96 = arith.constant 0 : index
    %91 = vector.load %arg9[%c2_94, %c0_95, %c0_96] : memref<3x64x64xbf16, #tpu.memory_space<vmem>>, vector<1x64x64xbf16>
    %92 = vector.shape_cast %91 : vector<1x64x64xbf16> to vector<64x64xbf16>
    %cst_97 = arith.constant dense<0.000000e+00> : vector<16x64xf32>
    %93 = tpu.matmul %90, %92, %cst_97 {dimension_numbers = #tpu.dot_dimension_numbers<[1], [0], [0], [1], [0, 0, 1, 1], [], []>} : vector<16x64xbf16>, vector<64x64xbf16>, vector<16x64xf32> -> vector<16x64xf32>
    %94 = arith.addf %89, %93 : vector<16x64xf32>
    %cst_98 = arith.constant 0.000000e+00 : f32
    %95 = vector.broadcast %cst_98 : f32 to vector<16x64xf32>
    %96 = arith.maximumf %94, %95 : vector<16x64xf32>
    %c0_99 = arith.constant 0 : index
    %c0_100 = arith.constant 0 : index
    %c0_101 = arith.constant 0 : index
    %97 = vector.load %arg11[%c0_99, %c0_100, %c0_101] : memref<1x16x64xf32, #tpu.memory_space<vmem>>, vector<1x16x64xf32>
    %98 = vector.shape_cast %97 : vector<1x16x64xf32> to vector<16x64xf32>
    %99 = vector.shape_cast %96 : vector<16x64xf32> to vector<1x16x64xf32>
    tpu.vector_store %arg11[%c0_99, %c0_100, %c0_101], %99 {strides = array<i32>} : memref<1x16x64xf32, #tpu.memory_space<vmem>>, vector<1x16x64xf32>,
    return
  }
  func.func @transform_0(%arg0: i32) -> (i32, i32, i32) {
    %c0_i32 = arith.constant 0 : i32
    %c0_i32_0 = arith.constant 0 : i32
    %c0_i32_1 = arith.constant 0 : i32
    return %arg0, %c0_i32, %c0_i32_0 : i32, i32, i32
  }
  func.func @transform_1(%arg0: i32) -> (i32, i32, i32) {
    %c0_i32 = arith.constant 0 : i32
    %c0_i32_0 = arith.constant 0 : i32
    %c0_i32_1 = arith.constant 0 : i32
    return %arg0, %c0_i32, %c0_i32_0 : i32, i32, i32
  }
  func.func @transform_2(%arg0: i32) -> (i32, i32, i32) {
    %c0_i32 = arith.constant 0 : i32
    %c0_i32_0 = arith.constant 0 : i32
    %c0_i32_1 = arith.constant 0 : i32
    %c0_i32_2 = arith.constant 0 : i32
    return %c0_i32, %c0_i32_0, %c0_i32_1 : i32, i32, i32
  }
  func.func @transform_3(%arg0: i32) -> (i32, i32) {
    %c0_i32 = arith.constant 0 : i32
    %c0_i32_0 = arith.constant 0 : i32
    %c0_i32_1 = arith.constant 0 : i32
    return %c0_i32, %c0_i32_0 : i32, i32
  }
  func.func @transform_4(%arg0: i32) -> (i32, i32, i32) {
    %c0_i32 = arith.constant 0 : i32
    %c0_i32_0 = arith.constant 0 : i32
    %c0_i32_1 = arith.constant 0 : i32
    %c0_i32_2 = arith.constant 0 : i32
    return %c0_i32, %c0_i32_0, %c0_i32_1 : i32, i32, i32
  }
  func.func @transform_5(%arg0: i32) -> (i32, i32, i32) {
    %c0_i32 = arith.constant 0 : i32
    %c0_i32_0 = arith.constant 0 : i32
    %c0_i32_1 = arith.constant 0 : i32
    %c0_i32_2 = arith.constant 0 : i32
    return %c0_i32, %c0_i32_0, %c0_i32_1 : i32, i32, i32
  }
  func.func @transform_6(%arg0: i32) -> (i32, i32, i32) {
    %c0_i32 = arith.constant 0 : i32
    %c0_i32_0 = arith.constant 0 : i32
    %c0_i32_1 = arith.constant 0 : i32
    %c0_i32_2 = arith.constant 0 : i32
    return %c0_i32, %c0_i32_0, %c0_i32_1 : i32, i32, i32
  }
  func.func @transform_7(%arg0: i32) -> (i32, i32) {
    %c0_i32 = arith.constant 0 : i32
    %c0_i32_0 = arith.constant 0 : i32
    %c0_i32_1 = arith.constant 0 : i32
    return %c0_i32, %c0_i32_0 : i32, i32
  }
  func.func @transform_8(%arg0: i32) -> (i32, i32, i32) {
    %c0_i32 = arith.constant 0 : i32
    %c0_i32_0 = arith.constant 0 : i32
    %c0_i32_1 = arith.constant 0 : i32
    %c0_i32_2 = arith.constant 0 : i32
    return %c0_i32, %c0_i32_0, %c0_i32_1 : i32, i32, i32
  }
  func.func @transform_9(%arg0: i32) -> (i32, i32) {
    %c0_i32 = arith.constant 0 : i32
    %c0_i32_0 = arith.constant 0 : i32
    %c0_i32_1 = arith.constant 0 : i32
    return %c0_i32, %c0_i32_0 : i32, i32
  }
  func.func @transform_10(%arg0: i32) -> (i32, i32, i32) {
    %c0_i32 = arith.constant 0 : i32
    %c0_i32_0 = arith.constant 0 : i32
    %c0_i32_1 = arith.constant 0 : i32
    return %arg0, %c0_i32, %c0_i32_0 : i32, i32, i32
  }
}

</mosaic_0001>

<bundles_post_ra>
// kernel: tile.23
= control target key start
LH: loop header
LB: loop body
LE: loop exit
PB: predicated region body
PF: predicated region fallthrough
CT: control target
= control target key end

     0   :  { %s28_s0 = inlined_call_operand.vmem [shape: f32[4], index: 0, kind: input, shape index: {}]   ;;  %s29_s1 = inlined_call_operand.vmem [shape: f32[16,4], index: 1, kind: output, shape index: {}]  }
   0x1   :  { %v4_v0 = vld [vmem:[%s28_s0] ss:$0 sm:$0xff] }
   0x2   :  { %5 = vst [vmem:[%s29_s1] sm:$0xff] %v4_v0  ;;  %8 = vst [vmem:[%s29_s1 + $0x8] sm:$0xff] %v4_v0 }

// kernel: tile.24
= control target key start
LH: loop header
LB: loop body
LE: loop exit
PB: predicated region body
PF: predicated region fallthrough
CT: control target
= control target key end

     0   :  { %s131_s10 = smov 60   ;;  %s132_s11 = smov 52   ;;  %vm3_vm0 = vcmask 31744   ;;  %vm9_vm1 = vcmask 523744   ;;  %vm15_vm2 = vcmask 490944   ;;  %vm21_vm3 = vcmask 458144   ;;  %s207_s0 = inlined_call_operand.vmem [shape: f32[16,4], index: 0, kind: input, shape index: {}]   ;;  %s208_s1 = inlined_call_operand.vmem [shape: f32[1,64], index: 1, kind: output, shape index: {}]  }
   0x1   :  { %v101_v0 = vld [vmem:[%s207_s0 + $0xf] sm:$0x1]   ;;  %v103_v1 = vld [vmem:[%s207_s0 + $0xd] sm:$0x1]   ;;  %v102_v2 = vld [vmem:[%s207_s0 + $0xe] sm:$0x1]  }
   0x2   :  { %7 = vrot.lane.b32.xlu0 %v101_v0, %s131_s10  ;;  %19 = vrot.lane.b32.xlu1 %v103_v1, %s132_s11  ;;  %v104_v3 = vld [vmem:[%s207_s0 + $0xc] sm:$0x1]   ;;  %s133_s16 = smov 56   ;;  %s134_s17 = smov 48   ;;  %v105_v4 = vld [vmem:[%s207_s0 + $0xb] sm:$0x1]  }
   0x3   :  { %v106_v5 = vld [vmem:[%s207_s0 + $0xa] sm:$0x1]   ;;  %v2_v6 = vld [vmem:[%s207_s0] sm:$0x1]   ;;  %s135_s24 = smov 44   ;;  %s136_s25 = smov 40  }
   0x4   :  { %4 = vst.msk [vmem:[#allocation0] sm:$0x1] %vm3_vm0, %v2_v6   ;;  %v107_v7 = vld [vmem:[%s207_s0 + $0x9] sm:$0x1]   ;;  %v108_v8 = vld [vmem:[%s207_s0 + $0x8] sm:$0x1]  }
   0x5   :  { %s137_s30 = smov 36   ;;  %s138_s2 = smov 32   ;;  %v109_v9 = vld [vmem:[%s207_s0 + $0x7] sm:$0x1]   ;;  %v110_v10 = vld [vmem:[%s207_s0 + $0x6] sm:$0x1]  }
   0x6   :  { %13 = vrot.lane.b32.xlu0 %v102_v2, %s133_s16  ;;  %25 = vrot.lane.b32.xlu1 %v104_v3, %s134_s17  ;;  %s139_s7 = smov 28   ;;  %s140_s8 = smov 24   ;;  %v111_v11 = vld [vmem:[%s207_s0 + $0x5] sm:$0x1]   ;;  %v112_v12 = vld [vmem:[%s207_s0 + $0x4] sm:$0x1]  }
   0x7   :  { %s141_s13 = smov 20   ;;  %s142_s14 = smov 16   ;;  %v113_v13 = vld [vmem:[%s207_s0 + $0x3] sm:$0x1]   ;;  %v114_v14 = vld [vmem:[%s207_s0 + $0x2] sm:$0x1]  }
   0x8   :  { %s143_s19 = smov 12   ;;  %s144_s20 = smov 8   ;;  %v115_v15 = vld [vmem:[%s207_s0 + $0x1] sm:$0x1]   ;;  %vm27_vm4 = vcmask 425344   ;;  %vm33_vm5 = vcmask 392544  }
   0x9   :  { %s145_s0 = smov 4   ;;  %vm39_vm6 = vcmask 359744   ;;  %vm45_vm7 = vcmask 326944   ;;  %vm51_vm8 = vcmask 294144   ;;  %vm57_vm9 = vcmask 261344  }
   0xa   :  { %31 = vrot.lane.b32.xlu0 %v105_v4, %s135_s24  ;;  %37 = vrot.lane.b32.xlu1 %v106_v5, %s136_s25  ;;  %vm63_vm10 = vcmask 228544   ;;  %vm69_vm11 = vcmask 195744   ;;  %vm75_vm12 = vcmask 162944   ;;  %vm81_vm13 = vcmask 130144  }
   0xb   :  { %vm87_vm14 = vcmask 97344   ;;  %vm93_vm15 = vcmask 64544  }
   0xe   :  { %43 = vrot.lane.b32.xlu0 %v107_v7, %s137_s30  ;;  %49 = vrot.lane.b32.xlu1 %v108_v8, %s138_s2 }
  0x12   :  { %55 = vrot.lane.b32.xlu0 %v109_v9, %s139_s7  ;;  %61 = vrot.lane.b32.xlu1 %v110_v10, %s140_s8 }
  0x16   :  { %67 = vrot.lane.b32.xlu0 %v111_v11, %s141_s13  ;;  %73 = vrot.lane.b32.xlu1 %v112_v12, %s142_s14 }
  0x1a   :  { %79 = vrot.lane.b32.xlu0 %v113_v13, %s143_s19  ;;  %85 = vrot.lane.b32.xlu1 %v114_v14, %s144_s20 }
  0x1e   :  { %91 = vrot.lane.b32.xlu0 %v115_v15, %s145_s0 }
  0x74   :  { %v8_v16 = vpop.permute.xlu0 %7   ;;  %v20_v17 = vpop.permute.xlu1 %19  }
  0x75   :  { %10 = vst.msk [vmem:[#allocation0] sm:$0x1] %vm9_vm1, %v8_v16  }
  0x78   :  { %v14_v18 = vpop.permute.xlu0 %13   ;;  %v26_v19 = vpop.permute.xlu1 %25  }
  0x79   :  { %16 = vst.msk [vmem:[#allocation0] sm:$0x1] %vm15_vm2, %v14_v18  }
  0x7a   :  { %22 = vst.msk [vmem:[#allocation0] sm:$0x1] %vm21_vm3, %v20_v17  }
  0x7b   :  { %28 = vst.msk [vmem:[#allocation0] sm:$0x1] %vm27_vm4, %v26_v19  }
  0x7c   :  { %v32_v20 = vpop.permute.xlu0 %31   ;;  %v38_v21 = vpop.permute.xlu1 %37  }
  0x7d   :  { %34 = vst.msk [vmem:[#allocation0] sm:$0x1] %vm33_vm5, %v32_v20  }
  0x7e   :  { %40 = vst.msk [vmem:[#allocation0] sm:$0x1] %vm39_vm6, %v38_v21  }
  0x80   :  { %v44_v22 = vpop.permute.xlu0 %43   ;;  %v50_v23 = vpop.permute.xlu1 %49  }
  0x81   :  { %46 = vst.msk [vmem:[#allocation0] sm:$0x1] %vm45_vm7, %v44_v22  }
  0x82   :  { %52 = vst.msk [vmem:[#allocation0] sm:$0x1] %vm51_vm8, %v50_v23  }
  0x84   :  { %v56_v24 = vpop.permute.xlu0 %55   ;;  %v62_v25 = vpop.permute.xlu1 %61  }
  0x85   :  { %58 = vst.msk [vmem:[#allocation0] sm:$0x1] %vm57_vm9, %v56_v24  }
  0x86   :  { %64 = vst.msk [vmem:[#allocation0] sm:$0x1] %vm63_vm10, %v62_v25  }
  0x88   :  { %v68_v26 = vpop.permute.xlu0 %67   ;;  %v74_v27 = vpop.permute.xlu1 %73  }
  0x89   :  { %70 = vst.msk [vmem:[#allocation0] sm:$0x1] %vm69_vm11, %v68_v26  }
  0x8a   :  { %76 = vst.msk [vmem:[#allocation0] sm:$0x1] %vm75_vm12, %v74_v27  }
  0x8c   :  { %v80_v28 = vpop.permute.xlu0 %79   ;;  %v86_v29 = vpop.permute.xlu1 %85  }
  0x8d   :  { %82 = vst.msk [vmem:[#allocation0] sm:$0x1] %vm81_vm13, %v80_v28  }
  0x8e   :  { %88 = vst.msk [vmem:[#allocation0] sm:$0x1] %vm87_vm14, %v86_v29  }
  0x90   :  { %v92_v30 = vpop.permute.xlu0 %91  }
  0x91   :  { %94 = vst.msk [vmem:[#allocation0] sm:$0x1] %vm93_vm15, %v92_v30  }
  0x98   :  { %v98_v31 = vld [vmem:[#allocation0] sm:$0x1] }
  0x99   :  { %100 = vst [vmem:[%s208_s1] sm:$0x1] %v98_v31 }

// kernel: upconv_forward.1
= control target key start
LH: loop header
LB: loop body
LE: loop exit
PB: predicated region body
PF: predicated region fallthrough
CT: control target
= control target key end

     0   :  { %s2211_s13 = smov 0   ;;  %s2531_s0 = inlined_call_operand.vmem [shape: f32[2,8,64], index: 0, kind: input, shape index: {}]   ;;  %s2532_s1 = inlined_call_operand.vmem [shape: f32[2,16,64], index: 1, kind: input, shape index: {}]   ;;  %s2533_s2 = inlined_call_operand.vmem [shape: bf16[2,64,64], index: 2, kind: input, shape index: {}]   ;;  %s2534_s3 = inlined_call_operand.vmem [shape: f32[1,64], index: 3, kind: input, shape index: {}]   ;;  %s2535_s4 = inlined_call_operand.vmem [shape: bf16[2,16,8], index: 4, kind: input, shape index: {}]   ;;  %s2536_s5 = inlined_call_operand.vmem [shape: bf16[3,64,64], index: 5, kind: input, shape index: {}]   ;;  %s2537_s6 = inlined_call_operand.vmem [shape: bf16[3,64,64], index: 6, kind: input, shape index: {}]   ;;  %s2538_s7 = inlined_call_operand.vmem [shape: f32[1,64], index: 7, kind: input, shape index: {}]   ;;  %s2539_s8 = inlined_call_operand.vmem [shape: bf16[3,64,64], index: 8, kind: input, shape index: {}]   ;;  %s2540_s9 = inlined_call_operand.vmem [shape: f32[1,64], index: 9, kind: input, shape index: {}]   ;;  %s2541_s10 = inlined_call_operand.vmem [shape: f32[2,16,64], index: 10, kind: output, shape index: {}]  }
   0x1 LB: > { %s1679_s14 = sadd.s32 4294967295, %s2151_s13   ;;  %p1683_p0 = scmp.ge.s32.totalorder %s2151_s13, 1  ;;  %s2151_s13 = sphi %s2211_s13, %s20_s13  }
   0x2   : > { %p321_p1 = scmp.lt.s32.totalorder %s2151_s13, 3 }
   0x4   : > { %p322_p2 = pnand %p1683_p0, %p321_p1 }
   0x5   : > { %v2087_v0 = vld [vmem:[%s2533_s2] sm:$0xff] (!%p322_p2)   ;;  %v2153_v1 = vmov (!%p322_p2), 0.0   ;;  %v2088_v2 = vld [vmem:[%s2533_s2 + $0x8] sm:$0xff] (!%p322_p2)   ;;  %vm2154_vm0 = vmmov (!%p322_p2), 0   ;;  %p363_p3 = scmp.lt.s32.totalorder (!%p322_p2), %s1679_s14, 1  ;;  %v2089_v3 = vld [vmem:[%s2533_s2 + $0x10] sm:$0xff] (!%p322_p2)  }
   0x6   : > { %325 = sbr.rel (%p322_p2) target bundleno = 1069 (0x42d), region = 60  ;;  %1896 = vmatprep.subr.bf16.mxu0 (!%p322_p2), %v2153_v1  ;;  %1932 = vmatprep.subr.bf16.mxu1 (!%p322_p2), %v2153_v1  ;;  %v2090_v4 = vld [vmem:[%s2533_s2 + $0x18] sm:$0xff] (!%p322_p2)   ;;  %vm430_vm1 = vcmask (!%p322_p2), 523264   ;;  %v2091_v7 = vld [vmem:[%s2533_s2 + $0x20] sm:$0xff] (!%p322_p2)   ;;  %v2092_v8 = vld [vmem:[%s2533_s2 + $0x28] sm:$0xff] (!%p322_p2)   ;;  %vm378_vm2 = vcmask (!%p322_p2), 519168  }
   0x7   : > { %1897 = vmatpush3.bf16.msra.mxu0 (!%p322_p2), %v2087_v0  ;;  %1904 = vmatprep.mubr.msk.bf16.mxu0 (!%p322_p2), %vm2154_vm0, %v2153_v1  ;;  %v2093_v9 = vld [vmem:[%s2533_s2 + $0x30] sm:$0xff] (!%p322_p2)   ;;  %v2094_v10 = vld [vmem:[%s2533_s2 + $0x38] sm:$0xff] (!%p322_p2)   ;;  %v2155_v11 = vmov (!%p322_p2), 0   ;;  %v1689_v16 = vld [vmem:[%s2534_s3] ss:$0 sm:$0xff] (!%p322_p2)  ;;  %vm565_vm3 = vcmask (!%p322_p2), 1043456  }
   0x8   : > { %1898 = vmatprep.subr.bf16.mxu0 (!%p322_p2), %v2153_v1  ;;  %1940 = vmatprep.mubr.msk.bf16.mxu1 (!%p322_p2), %vm2154_vm0, %v2153_v1  ;;  %379 = vst.msk [vmem:[#allocation2] sm:$0xf] (!%p322_p2), %vm378_vm2, %v2155_v11  ;;  %383 = vst.msk [vmem:[#allocation3] sm:$0xf] (!%p322_p2), %vm378_vm2, %v2155_v11  ;;  %v2095_v28 = vld [vmem:[%s2535_s4 + $0x8] sm:$0xff] (!%p322_p2)   ;;  %vm561_vm4 = vcmask (!%p322_p2), 64512  }
   0x9   : > { %380 = vst.msk [vmem:[#allocation2 + $0x4] sm:$0xf] (!%p322_p2), %vm378_vm2, %v2155_v11  ;;  %384 = vst.msk [vmem:[#allocation3 + $0x4] sm:$0xf] (!%p322_p2), %vm378_vm2, %v2155_v11  ;;  %v2096_v30 = vld [vmem:[%s2535_s4] sm:$0xff] (!%p322_p2)   ;;  %vm381_vm5 = vcmask (!%p322_p2), 516096  }
   0xa   : > { %386 = vst.msk [vmem:[#allocation4] sm:$0xf] (!%p322_p2), %vm378_vm2, %v2155_v11  ;;  %387 = vst.msk [vmem:[#allocation4 + $0x4] sm:$0xf] (!%p322_p2), %vm378_vm2, %v2155_v11  ;;  %v2097_v36 = vld [vmem:[%s2536_s5] sm:$0xff] (!%p322_p2)   ;;  %v2098_v40 = vld [vmem:[%s2536_s5 + $0x8] sm:$0xff] (!%p322_p2)  }
   0xb   : > { %1899 = vmatpush3.bf16.msra.mxu0 (!%p322_p2), %v2088_v2  ;;  %382 = vst.msk [vmem:[#allocation2 + $0x8] sm:$0x1] (!%p322_p2), %vm381_vm5, %v2155_v11  ;;  %385 = vst.msk [vmem:[#allocation3 + $0x8] sm:$0x1] (!%p322_p2), %vm381_vm5, %v2155_v11  ;;  %1933 = vmatpush3.bf16.msra.mxu1 (!%p322_p2), %v2097_v36  ;;  %vm692_vm6 = vsmask.f32 (!%p322_p2), 7938 }
   0xc   : > { %1900 = vmatprep.subr.bf16.mxu0 (!%p322_p2), %v2153_v1  ;;  %388 = vst.msk [vmem:[#allocation4 + $0x8] sm:$0x1] (!%p322_p2), %vm381_vm5, %v2155_v11  ;;  %1934 = vmatprep.subr.bf16.mxu1 (!%p322_p2), %v2153_v1  ;;  %vm668_vm7 = vsmask.f32 (!%p322_p2), 256  ;;  %vm669_vm8 = vsmask.f32 (!%p322_p2), 4368  ;;  %vm2308_vm9 = vmand (!%p322_p2), %vm378_vm2, %vm692_vm6 }
   0xd   : > { %s2549_s14 = smov (!%p363_p3, %s1679_s14), 1  ;;  %v2099_v46 = vld [vmem:[%s2536_s5 + $0x10] sm:$0xff]   ;;  %vm2318_vm10 = vmor %vm668_vm7, %vm669_vm8  ;;  %v2100_v54 = vld [vmem:[%s2536_s5 + $0x18] sm:$0xff]   ;;  %vm935_vm12 = vsmask.f32 7424  ;;  %vm1133_vm13 = vcmask 1046528  }
   0xe   : > { %s1684_s21 = sshll.u32 %s2549_s14, 3  ;;  %s1829_s23 = sshll.u32 %s2549_s14, 4  ;;  %vm2324_vm11 = vmand %vm381_vm5, %vm668_vm7  ;;  %v2135_v48 = vld [vmem:[%s2539_s8 + $0x28] sm:$0xff]  }
   0xf   : > { %s366_s24 = scalar_lea.vmem %s2531_s0, %s1684_s21  ;;  %1901 = vmatpush3.bf16.msra.mxu0 %v2089_v3  ;;  %s371_s26 = scalar_lea.vmem %s2532_s1, %s1829_s23  ;;  %1935 = vmatpush3.bf16.msra.mxu1 %v2098_v40  ;;  %v731_v44 = vld [vmem:[#allocation3] sm:$0xf] }
  0x10   : > { %v389_v5 = vld [vmem:[%s366_s24] sm:$0xff]  ;;  %1902 = vmatprep.subr.bf16.mxu0 %v2153_v1  ;;  %v704_v32 = vld [vmem:[%s371_s26 + $0x8] sm:$0xff]  ;;  %1936 = vmatprep.subr.bf16.mxu1 %v2153_v1  ;;  %s376_s19 = scalar_lea.vmem %s2541_s10, %s1829_s23 }
  0x11   : > { %v390_v6 = vpack.c.bf16 %v389_v5, %v389_v5  ;;  %v703_v31 = vld [vmem:[%s371_s26] sm:$0xff]  ;;  %v1834_v34 = vpack.c.bf16 %v704_v32, %v704_v32  ;;  %v2114_v40 = vld [vmem:[%s2537_s6 + $0x28] sm:$0xff]  }
  0x12   : > { %v1833_v33 = vpack.c.bf16 %v703_v31, %v703_v31  ;;  %v735_v52 = vld [vmem:[#allocation3 + $0x8] sm:$0x1] }
  0x13   : > { %1903 = vmatpush3.bf16.msra.mxu0 %v2090_v4  ;;  %v720_v37 = vshrl.u32 %v1834_v34, 16  ;;  %v723_v42 = vshll.u32 %v1834_v34, 16  ;;  %1937 = vmatpush3.bf16.msra.mxu1 %v2099_v46  ;;  %v694_v4 = vld [vmem:[#allocation2] sm:$0xf] }
  0x14   : > { %1908 = vmatprep.subr.bf16.mxu0 %v2153_v1  ;;  %v712_v35 = vshrl.u32 %v1833_v33, 16  ;;  %v715_v39 = vshll.u32 %v1833_v33, 16  ;;  %1938 = vmatprep.subr.bf16.mxu1 %v2153_v1 }
  0x15   : > { %v722_v41 = vrot.slane %v720_v37, 7  ;;  %v2113_v37 = vld [vmem:[%s2537_s6 + $0x20] sm:$0xff]  }
  0x16   : > { %1905 = vmatmul.mubr.msk.bf16.vlgmr.msra.gmra.mrb[0].mxu0 %vm430_vm1, %v390_v6  ;;  %v714_v38 = vrot.slane %v712_v35, 7 }
  0x17   : > { %1909 = vmatpush3.bf16.msra.mxu0 %v2091_v7  ;;  %1916 = vmatprep.mubr.msk.bf16.mxu0 %vm2154_vm0, %v2153_v1  ;;  %v725_v50 = vor.u32 %v723_v42, %v722_v41  ;;  %v727_v51 = vrot.slane %v722_v41, 4 }
  0x18   : > { %1910 = vmatprep.subr.bf16.mxu0 %v2153_v1  ;;  %v717_v43 = vor.u32 %v715_v39, %v714_v38  ;;  %v718_v49 = vrot.slane %v714_v38, 4  ;;  %1939 = vmatpush3.bf16.msra.mxu1 %v2100_v54  ;;  %v2119_v54 = vld [vmem:[%s2536_s5 + $0x40] sm:$0xff]  }
  0x19   : > { %v736_v56 = vsel %vm2324_vm11, %v727_v51, %v735_v52  ;;  %1944 = vmatprep.subr.bf16.mxu1 %v2153_v1 }
  0x1a   : > { %v732_v47 = vsel %vm2308_vm9, %v717_v43, %v731_v44  ;;  %v726_v55 = vsel %vm2318_vm10, %v718_v49, %v725_v50  ;;  %737 = vst [vmem:[#allocation3 + $0x8] sm:$0x1] %v736_v56  ;;  %v2115_v43 = vld [vmem:[%s2537_s6 + $0x30] sm:$0xff]   ;;  %v2116_v49 = vld [vmem:[%s2537_s6 + $0x38] sm:$0xff]  }
  0x1b   : > { %1911 = vmatpush3.bf16.msra.mxu0 %v2092_v8  ;;  %733 = vst [vmem:[#allocation3] sm:$0xf] %v732_v47  ;;  %734 = vst.msk [vmem:[#allocation3 + $0x4] sm:$0xf] %vm378_vm2, %v726_v55  ;;  %v700_v8 = vld [vmem:[#allocation2 + $0x8] sm:$0x1] }
  0x1c   : > { %1912 = vmatprep.subr.bf16.mxu0 %v2153_v1  ;;  %v2120_v55 = vld [vmem:[%s2536_s5 + $0x48] sm:$0xff]   ;;  %v2121_v56 = vld [vmem:[%s2536_s5 + $0x50] sm:$0xff]  }
  0x1f   : > { %1913 = vmatpush3.bf16.msra.mxu0 %v2093_v9 }
  0x20   : > { %1914 = vmatprep.subr.bf16.mxu0 %v2153_v1 }
  0x21   : > { %v2118_v41 = vld [vmem:[#allocation3 + $0x8] ss:$0 sps:$4 sm:$0x11]  }
  0x22   : > { %v1018_v33 = vld [vmem:[#allocation3] sm:$0xf]  ;;  %v2385_v34 = vld [vmem:[#allocation3 + $0x4] sm:$0xf]  ;;  %v1046_v47 = vshll.u32 %v2118_v41, 16 }
  0x23   : > { %1915 = vmatpush3.bf16.msra.mxu0 %v2094_v10  ;;  %v1754_v38 = vcombine.low %v1018_v33, %v2385_v34 }
  0x24   : > { %1920 = vmatprep.subr.bf16.mxu0 %v2153_v1  ;;  %v1048_v51 = vrot.slane %v1046_v47, 1  ;;  %v2137_v47 = vld [vmem:[%s2539_s8 + $0x38] sm:$0xff]  }
  0x25   : > { %v1041_v42 = vshll.u32 %v1754_v38, 16  ;;  %v1039_v44 = vshrl.u32 %v1754_v38, 16 }
  0x26   : > { %1917 = vmatmul.mubr.msk.bf16.vlgmr.msra.gmra.mrb[4].mxu0 %vm430_vm1, %v390_v6 }
  0x27   : > { %1922 = vmatprep.mubr.msk.bf16.mxu0 %vm2154_vm0, %v2153_v1  ;;  %v1043_v46 = vrot.slane %v1041_v42, 1 }
  0x29   : > { %v1044_v50 = vor.u32 %v1043_v46, %v1039_v44 }
  0x2b   : > { %v1049_v52 = vsel %vm935_vm12, %v1044_v50, %v1048_v51 }
  0xe9   : > { %v468_v12 = vpop.f32.mrb[0].mxu0 }
  0xea   : > { %v1906_v13 = vpop.f32.mrb[1].mxu0  ;;  %v469_v17 = vadd.f32 %v1689_v16, %v468_v12 }
  0xeb   : > { %v471_v14 = vpop.f32.mrb[2].mxu0 }
  0xec   : > { %v1907_v15 = vpop.f32.mrb[3].mxu0  ;;  %v547_v22 = vmax.f32 %v469_v17, 0.0  ;;  %v2103_v17 = vld [vmem:[%s2537_s6 + $0x8] sm:$0xff]  }
  0xed   : > { %v2102_v15 = vld [vmem:[%s2537_s6] sm:$0xff]  }
  0xee   : > { %v548_v26 = vpack.c.bf16 %v547_v22, %v547_v22  ;;  %v2107_v22 = vld [vmem:[%s2536_s5 + $0x20] sm:$0xff]  }
  0xf0   : > { %v619_v29 = vsel %vm565_vm3, %v548_v26, 0 }
  0xf9   : > { %v541_v18 = vpop.f32.mrb[4].mxu0 }
  0xfa   : > { %v542_v19 = vadd.f32 %v1689_v16, %v541_v18  ;;  %v1918_v20 = vpop.f32.mrb[5].mxu0  ;;  %v2104_v18 = vld [vmem:[%s2537_s6 + $0x10] sm:$0xff]  }
  0xfb   : > { %v544_v21 = vpop.f32.mrb[6].mxu0  ;;  %v2106_v20 = vld [vmem:[#allocation3] sm:$0xff]  }
  0xfc   : > { %v549_v23 = vmax.f32 %v542_v19, 0.0  ;;  %v1919_v24 = vpop.f32.mrb[7].mxu0  ;;  %v2105_v19 = vld [vmem:[%s2537_s6 + $0x18] sm:$0xff]  }
  0xfe   : > { %v550_v25 = vpack.c.bf16 %v549_v23, %v549_v23 }
 0x100   : > { %v567_v27 = vsel %vm565_vm3, %v550_v25, 0  ;;  %v2108_v25 = vld [vmem:[%s2536_s5 + $0x28] sm:$0xff]  }
 0x101   : > { %1921 = vmatpush3.bf16.msra.mxu0 %v567_v27  ;;  %v2109_v27 = vld [vmem:[%s2536_s5 + $0x30] sm:$0xff]  }
 0x102   : > { %1926 = vmatprep.subr.bf16.mxu0 %v2153_v1 }
 0x104   : > { %1923 = vmatmul.mubr.msk.bf16.vlgmr.msra.gmra.mrb[8].mxu0 %vm561_vm4, %v2095_v28 }
 0x105   : > { %1927 = vmatpush3.bf16.msra.mxu0 %v619_v29  ;;  %1928 = vmatprep.mubr.msk.bf16.mxu0 %vm2154_vm0, %v2153_v1 }
 0x106   : > { %2004 = vmatprep.subr.bf16.mxu0 %v2153_v1 }
 0x110   : > { %1929 = vmatmul.mubr.msk.bf16.vlgmr.msra.gmra.mrb[8].mxu0 %vm561_vm4, %v2096_v30  ;;  %v2110_v30 = vld [vmem:[%s2536_s5 + $0x38] sm:$0xff]  }
 0x111   : > { %2012 = vmatprep.mubr.msk.bf16.mxu0 %vm2154_vm0, %v2153_v1 }
 0x1e3   : > { %v655_v57 = vpop.f32.mrb[8].mxu0 }
 0x1e4   : > { %v1831_v58 = vpack.c.bf16 %v655_v57, %v655_v57  ;;  %v1930_v59 = vpop.f32.mrb[9].mxu0 }
 0x1e5   : > { %v658_v60 = vpop.f32.mrb[10].mxu0  ;;  %v2122_v59 = vld [vmem:[%s2536_s5 + $0x58] sm:$0xff]  }
 0x1e6   : > { %v672_v61 = vshrl.u32 %v1831_v58, 16  ;;  %v1832_v62 = vpack.c.bf16 %v658_v60, %v658_v60  ;;  %v1931_v63 = vpop.f32.mrb[11].mxu0  ;;  %v675_v2 = vshll.u32 %v1831_v58, 16 }
 0x1e8   : > { %v674_v0 = vrot.slane %v672_v61, 7  ;;  %v680_v3 = vshrl.u32 %v1832_v62, 16  ;;  %v683_v7 = vshll.u32 %v1832_v62, 16  ;;  %v2124_v62 = vld [vmem:[%s2537_s6 + $0x40] sm:$0xff]  }
 0x1ea   : > { %v677_v5 = vor.u32 %v675_v2, %v674_v0  ;;  %v682_v6 = vrot.slane %v680_v3, 7  ;;  %v678_v9 = vrot.slane %v674_v0, 4  ;;  %v2125_v0 = vld [vmem:[%s2537_s6 + $0x48] sm:$0xff]   ;;  %v2126_v3 = vld [vmem:[%s2537_s6 + $0x50] sm:$0xff]  }
 0x1eb   : > { %v1207_v2 = vld [vmem:[#allocation3] sm:$0xe] }
 0x1ec   : > { %v695_v10 = vsel %vm2308_vm9, %v677_v5, %v694_v4  ;;  %v685_v11 = vor.u32 %v683_v7, %v682_v6  ;;  %v687_v12 = vrot.slane %v682_v6, 4  ;;  %v1783_v4 = vcombine.low %v1207_v2, %v2385_v34  ;;  %v2127_v5 = vld [vmem:[%s2537_s6 + $0x58] sm:$0xff]  }
 0x1ed   : > { %696 = vst [vmem:[#allocation2] sm:$0xf] %v695_v10  ;;  %v1221_v7 = vrot.slane %v2118_v41, 1  ;;  %v2130_v10 = vld [vmem:[%s2539_s8 + $0x8] sm:$0xff]  }
 0x1ee   : > { %v686_v13 = vsel %vm2318_vm10, %v678_v9, %v685_v11  ;;  %v701_v14 = vsel %vm2324_vm11, %v687_v12, %v700_v8  ;;  %v1220_v6 = vrot.slane %v1783_v4, 1  ;;  %v2129_v9 = vld [vmem:[%s2539_s8] sm:$0xff]   ;;  %v2131_v11 = vld [vmem:[%s2539_s8 + $0x10] sm:$0xff]   ;;  %v2132_v12 = vld [vmem:[%s2539_s8 + $0x18] sm:$0xff]  }
 0x1ef   : > { %697 = vst.msk [vmem:[#allocation2 + $0x4] sm:$0xf] %vm378_vm2, %v686_v13  ;;  %702 = vst [vmem:[#allocation2 + $0x8] sm:$0x1] %v701_v14  ;;  %2005 = vmatpush3.bf16.msra.mxu0 %v2129_v9  ;;  %v1718_v13 = vld [vmem:[%s2538_s7] ss:$0 sm:$0xff] }
 0x1f0   : > { %v1222_v8 = vsel %vm1133_vm13, %v1220_v6, %v1221_v7  ;;  %2006 = vmatprep.subr.bf16.mxu0 %v2153_v1 }
 0x1f3   : > { %2007 = vmatpush3.bf16.msra.mxu0 %v2130_v10 }
 0x1f4   : > { %v915_v23 = vld [vmem:[#allocation2] sm:$0xf]  ;;  %2008 = vmatprep.subr.bf16.mxu0 %v2153_v1 }
 0x1f5   : > { %v1120_v57 = vld [vmem:[#allocation2] sm:$0xe] }
 0x1f6   : > { %v2101_v16 = vld [vmem:[#allocation2] sm:$0xff]   ;;  %v2112_v28 = vld [vmem:[#allocation2 + $0x8] ss:$0 sps:$4 sm:$0x11]  }
 0x1f7   : > { %1941 = vmatmul.mubr.msk.bf16.vlgmr.msra.gmra.mrb[0].mxu1 %vm430_vm1, %v2101_v16  ;;  %v2363_v21 = vld [vmem:[#allocation2 + $0x4] sm:$0xf]  ;;  %v944_v32 = vshll.u32 %v2112_v28, 16  ;;  %v1135_v61 = vrot.slane %v2112_v28, 1  ;;  %2009 = vmatpush3.bf16.msra.mxu0 %v2131_v11  ;;  %v1321_v28 = vld [vmem:[#allocation4] sm:$0xf] }
 0x1f8   : > { %1945 = vmatpush3.bf16.msra.mxu1 %v2102_v15  ;;  %1952 = vmatprep.mubr.msk.bf16.mxu1 %vm2154_vm0, %v2153_v1  ;;  %v1739_v24 = vcombine.low %v915_v23, %v2363_v21  ;;  %v1769_v58 = vcombine.low %v1120_v57, %v2363_v21  ;;  %v2142_v57 = vld [vmem:[%s2539_s8 + $0x50] sm:$0xff]  }
 0x1f9   : > { %1946 = vmatprep.subr.bf16.mxu1 %v2153_v1  ;;  %v946_v36 = vrot.slane %v944_v32, 1  ;;  %2010 = vmatprep.subr.bf16.mxu0 %v2153_v1  ;;  %v1325_v32 = vld [vmem:[#allocation4 + $0x8] sm:$0x1] }
 0x1fa   : > { %v939_v26 = vshll.u32 %v1739_v24, 16  ;;  %v937_v31 = vshrl.u32 %v1739_v24, 16  ;;  %v1134_v60 = vrot.slane %v1769_v58, 1 }
 0x1fb   : > { %2011 = vmatpush3.bf16.msra.mxu0 %v2132_v12 }
 0x1fc   : > { %1947 = vmatpush3.bf16.msra.mxu1 %v2103_v17  ;;  %v941_v29 = vrot.slane %v939_v26, 1  ;;  %v1136_v63 = vsel %vm1133_vm13, %v1134_v60, %v1135_v61  ;;  %2016 = vmatprep.subr.bf16.mxu0 %v2153_v1  ;;  %v2143_v60 = vld [vmem:[%s2539_s8 + $0x58] sm:$0xff]  }
 0x1fd   : > { %1948 = vmatprep.subr.bf16.mxu1 %v2153_v1 }
 0x1fe   : > { %v942_v35 = vor.u32 %v941_v29, %v937_v31 }
 0x200   : > { %1949 = vmatpush3.bf16.msra.mxu1 %v2104_v18  ;;  %v947_v39 = vsel %vm935_vm12, %v942_v35, %v946_v36 }
 0x201   : > { %1950 = vmatprep.subr.bf16.mxu1 %v2153_v1 }
 0x204   : > { %1951 = vmatpush3.bf16.msra.mxu1 %v2105_v19 }
 0x205   : > { %1956 = vmatprep.subr.bf16.mxu1 %v2153_v1 }
 0x207   : > { %1953 = vmatmul.mubr.msk.bf16.vlgmr.msra.gmra.mrb[0].mxu1 %vm430_vm1, %v2106_v20 }
 0x208   : > { %1957 = vmatpush3.bf16.msra.mxu1 %v2107_v22  ;;  %1964 = vmatprep.mubr.msk.bf16.mxu1 %vm2154_vm0, %v2153_v1 }
 0x209   : > { %1958 = vmatprep.subr.bf16.mxu1 %v2153_v1 }
 0x20c   : > { %1959 = vmatpush3.bf16.msra.mxu1 %v2108_v25 }
 0x20d   : > { %1960 = vmatprep.subr.bf16.mxu1 %v2153_v1 }
 0x210   : > { %1961 = vmatpush3.bf16.msra.mxu1 %v2109_v27 }
 0x211   : > { %1962 = vmatprep.subr.bf16.mxu1 %v2153_v1 }
 0x214   : > { %1963 = vmatpush3.bf16.msra.mxu1 %v2110_v30 }
 0x215   : > { %1968 = vmatprep.subr.bf16.mxu1 %v2153_v1 }
 0x217   : > { %1965 = vmatmul.mubr.msk.bf16.vlgmr.msra.gmra.mrb[0].mxu1 %vm430_vm1, %v947_v39  ;;  %v2134_v39 = vld [vmem:[%s2539_s8 + $0x20] sm:$0xff]  }
 0x218   : > { %1969 = vmatpush3.bf16.msra.mxu1 %v2113_v37  ;;  %1976 = vmatprep.mubr.msk.bf16.mxu1 %vm2154_vm0, %v2153_v1 }
 0x219   : > { %1970 = vmatprep.subr.bf16.mxu1 %v2153_v1 }
 0x21c   : > { %1971 = vmatpush3.bf16.msra.mxu1 %v2114_v40 }
 0x21d   : > { %1972 = vmatprep.subr.bf16.mxu1 %v2153_v1 }
 0x220   : > { %1973 = vmatpush3.bf16.msra.mxu1 %v2115_v43  ;;  %v2136_v43 = vld [vmem:[%s2539_s8 + $0x30] sm:$0xff]  }
 0x221   : > { %1974 = vmatprep.subr.bf16.mxu1 %v2153_v1 }
 0x224   : > { %1975 = vmatpush3.bf16.msra.mxu1 %v2116_v49 }
 0x225   : > { %1980 = vmatprep.subr.bf16.mxu1 %v2153_v1 }
 0x227   : > { %1977 = vmatmul.mubr.msk.bf16.vlgmr.msra.gmra.mrb[0].mxu1 %vm430_vm1, %v1049_v52 }
 0x228   : > { %1981 = vmatpush3.bf16.msra.mxu1 %v2119_v54  ;;  %1988 = vmatprep.mubr.msk.bf16.mxu1 %vm2154_vm0, %v2153_v1  ;;  %v2140_v54 = vld [vmem:[%s2539_s8 + $0x40] sm:$0xff]  }
 0x229   : > { %1982 = vmatprep.subr.bf16.mxu1 %v2153_v1 }
 0x22c   : > { %1983 = vmatpush3.bf16.msra.mxu1 %v2120_v55 }
 0x22d   : > { %1984 = vmatprep.subr.bf16.mxu1 %v2153_v1 }
 0x230   : > { %1985 = vmatpush3.bf16.msra.mxu1 %v2121_v56  ;;  %v2141_v56 = vld [vmem:[%s2539_s8 + $0x48] sm:$0xff]  }
 0x231   : > { %1986 = vmatprep.subr.bf16.mxu1 %v2153_v1 }
 0x234   : > { %1987 = vmatpush3.bf16.msra.mxu1 %v2122_v59 }
 0x235   : > { %1992 = vmatprep.subr.bf16.mxu1 %v2153_v1 }
 0x237   : > { %1989 = vmatmul.mubr.msk.bf16.vlgmr.msra.gmra.mrb[0].mxu1 %vm430_vm1, %v1136_v63 }
 0x238   : > { %1993 = vmatpush3.bf16.msra.mxu1 %v2124_v62  ;;  %2000 = vmatprep.mubr.msk.bf16.mxu1 %vm2154_vm0, %v2153_v1 }
 0x239   : > { %1994 = vmatprep.subr.bf16.mxu1 %v2153_v1 }
 0x23c   : > { %1995 = vmatpush3.bf16.msra.mxu1 %v2125_v0  ;;  %v1791_v0 = vld [vmem:[%s2540_s9] ss:$0 sm:$0xff] }
 0x23d   : > { %1996 = vmatprep.subr.bf16.mxu1 %v2153_v1 }
 0x240   : > { %1997 = vmatpush3.bf16.msra.mxu1 %v2126_v3 }
 0x241   : > { %1998 = vmatprep.subr.bf16.mxu1 %v2153_v1 }
 0x244   : > { %1999 = vmatpush3.bf16.msra.mxu1 %v2127_v5 }
 0x247   : > { %2001 = vmatmul.mubr.msk.bf16.vlgmr.msra.gmra.mrb[0].mxu1 %vm430_vm1, %v1222_v8 }
 0x31a   : > { %v1284_v14 = vpop.f32.mrb[0].mxu1 }
 0x31b   : > { %v2040_v15 = vadd.f32 %v1718_v13, %v1284_v14  ;;  %v2002_v16 = vpop.f32.mrb[1].mxu1 }
 0x31c   : > { %v1287_v17 = vpop.f32.mrb[2].mxu1 }
 0x31d   : > { %v1293_v18 = vmax.f32 %v2040_v15, 0.0  ;;  %v2041_v19 = vadd.f32 %v1718_v13, %v1287_v17  ;;  %v2003_v20 = vpop.f32.mrb[3].mxu1 }
 0x31f   : > { %v1835_v21 = vpack.c.bf16 %v1293_v18, %v1293_v18  ;;  %v1294_v22 = vmax.f32 %v2041_v19, 0.0 }
 0x321   : > { %v1302_v23 = vshrl.u32 %v1835_v21, 16  ;;  %v1836_v24 = vpack.c.bf16 %v1294_v22, %v1294_v22  ;;  %v1305_v26 = vshll.u32 %v1835_v21, 16 }
 0x323   : > { %v1304_v25 = vrot.slane %v1302_v23, 7  ;;  %v1310_v27 = vshrl.u32 %v1836_v24, 16  ;;  %v1313_v31 = vshll.u32 %v1836_v24, 16 }
 0x325   : > { %v1307_v29 = vor.u32 %v1305_v26, %v1304_v25  ;;  %v1312_v30 = vrot.slane %v1310_v27, 7  ;;  %v1308_v33 = vrot.slane %v1304_v25, 4 }
 0x327   : > { %v1322_v34 = vsel %vm2308_vm9, %v1307_v29, %v1321_v28  ;;  %v1315_v35 = vor.u32 %v1313_v31, %v1312_v30  ;;  %v1317_v36 = vrot.slane %v1312_v30, 4 }
 0x328   : > { %1323 = vst [vmem:[#allocation4] sm:$0xf] %v1322_v34 }
 0x329   : > { %v1316_v37 = vsel %vm2318_vm10, %v1308_v33, %v1315_v35  ;;  %v1326_v38 = vsel %vm2324_vm11, %v1317_v36, %v1325_v32 }
 0x32a   : > { %1324 = vst.msk [vmem:[#allocation4 + $0x4] sm:$0xf] %vm378_vm2, %v1316_v37  ;;  %1327 = vst [vmem:[#allocation4 + $0x8] sm:$0x1] %v1326_v38 }
 0x32f   : > { %v1420_v40 = vld [vmem:[#allocation4] sm:$0xf] }
 0x330   : > { %v1522_v58 = vld [vmem:[#allocation4] sm:$0xe] }
 0x331   : > { %v2133_v41 = vld [vmem:[#allocation4] sm:$0xff]   ;;  %v2139_v44 = vld [vmem:[#allocation4 + $0x8] ss:$0 sps:$4 sm:$0x11]  }
 0x332   : > { %v1421_v45 = vld [vmem:[#allocation4 + $0x4] sm:$0xf]  ;;  %2013 = vmatmul.mubr.msk.bf16.vlgmr.msra.gmra.mrb[12].mxu0 %vm430_vm1, %v2133_v41  ;;  %v1448_v50 = vshll.u32 %v2139_v44, 16  ;;  %v1536_v62 = vrot.slane %v2139_v44, 1 }
 0x333   : > { %v1806_v42 = vcombine.low %v1420_v40, %v1421_v45  ;;  %2017 = vmatpush3.bf16.msra.mxu0 %v2134_v39  ;;  %2024 = vmatprep.mubr.msk.bf16.mxu0 %vm2154_vm0, %v2153_v1  ;;  %v1821_v59 = vcombine.low %v1522_v58, %v1421_v45 }
 0x334   : > { %2018 = vmatprep.subr.bf16.mxu0 %v2153_v1  ;;  %v1450_v52 = vrot.slane %v1448_v50, 1 }
 0x335   : > { %v1443_v53 = vshll.u32 %v1806_v42, 16  ;;  %v1441_v49 = vshrl.u32 %v1806_v42, 16  ;;  %v1535_v61 = vrot.slane %v1821_v59, 1 }
 0x337   : > { %2019 = vmatpush3.bf16.msra.mxu0 %v2135_v48  ;;  %v1445_v46 = vrot.slane %v1443_v53, 1  ;;  %v1537_v63 = vsel %vm1133_vm13, %v1535_v61, %v1536_v62 }
 0x338   : > { %2020 = vmatprep.subr.bf16.mxu0 %v2153_v1 }
 0x339   : > { %v1446_v51 = vor.u32 %v1445_v46, %v1441_v49 }
 0x33b   : > { %2021 = vmatpush3.bf16.msra.mxu0 %v2136_v43  ;;  %v1451_v55 = vsel %vm935_vm12, %v1446_v51, %v1450_v52 }
 0x33c   : > { %2022 = vmatprep.subr.bf16.mxu0 %v2153_v1 }
 0x33f   : > { %2023 = vmatpush3.bf16.msra.mxu0 %v2137_v47 }
 0x340   : > { %2028 = vmatprep.subr.bf16.mxu0 %v2153_v1 }
 0x342   : > { %2025 = vmatmul.mubr.msk.bf16.vlgmr.msra.gmra.mrb[12].mxu0 %vm430_vm1, %v1451_v55 }
 0x343   : > { %2029 = vmatpush3.bf16.msra.mxu0 %v2140_v54  ;;  %2036 = vmatprep.mubr.msk.bf16.mxu0 %vm2154_vm0, %v2153_v1 }
 0x344   : > { %2030 = vmatprep.subr.bf16.mxu0 %v2153_v1 }
 0x347   : > { %2031 = vmatpush3.bf16.msra.mxu0 %v2141_v56 }
 0x348   : > { %2032 = vmatprep.subr.bf16.mxu0 %v2153_v1 }
 0x34b   : > { %2033 = vmatpush3.bf16.msra.mxu0 %v2142_v57 }
 0x34c   : > { %2034 = vmatprep.subr.bf16.mxu0 %v2153_v1 }
 0x34f   : > { %2035 = vmatpush3.bf16.msra.mxu0 %v2143_v60 }
 0x352   : > { %2037 = vmatmul.mubr.msk.bf16.vlgmr.msra.gmra.mrb[12].mxu0 %vm430_vm1, %v1537_v63 }
 0x425   : > { %v1599_v2 = vpop.f32.mrb[12].mxu0 }
 0x426   : > { %v2042_v3 = vadd.f32 %v1791_v0, %v1599_v2  ;;  %v2038_v4 = vpop.f32.mrb[13].mxu0 }
 0x427   : > { %v1602_v1 = vpop.f32.mrb[14].mxu0 }
 0x428   : > { %v1608_v5 = vmax.f32 %v2042_v3, 0.0  ;;  %v2043_v6 = vadd.f32 %v1791_v0, %v1602_v1  ;;  %v2039_v7 = vpop.f32.mrb[15].mxu0 }
 0x42a   : > { %1610 = vst.msk [vmem:[%s376_s19] sm:$0xff] %vm430_vm1, %v1608_v5  ;;  %v1609_v8 = vmax.f32 %v2043_v6, 0.0 }
 0x42c   : > { %1611 = vst.msk [vmem:[%s376_s19 + $0x8] sm:$0xff] %vm430_vm1, %v1609_v8 }
 0x42d PF: > { %s20_s13 = sadd.s32 1, %s2151_s13  }
 0x42e   : > { %p17_p4 = scmp.ge.s32.totalorder %s20_s13, 4  }
 0x430   :  { %19 = sbr.rel (!%p17_p4) target bundleno = 1 (0x1), region = 101 }

</bundles_post_ra>
